<compile_context>
chip_gen: v5e
topology: v5e:2x2
jax: 0.10.0
libtpu: 0.0.40
codegen_flags: <defaults>
</compile_context>

<pallas_src>
import jax
import jax.numpy as jnp
from jax.experimental import pallas as pl
from jax.experimental.pallas import tpu as pltpu

# ---- small synthetic config (consistent with the module's __init__) ----------
BATCH = 2
SEQ = 16
HIDDEN = 32                      # bert.config.hidden_size
VOCAB = 128                      # bert.config.vocab_size
NUM_TONES = 5
NUM_INITS = 23
NUM_FINALS = 34
NUM_PINYIN = 430
PINYIN_EXTRA = 16 + 16 + 5       # init + final + tone embedding widths (37)
PINYIN_SIZE = HIDDEN + PINYIN_EXTRA   # 69
LN_EPS = 1e-12

# lane/sublane-padded sizes
K_PAD = 128                      # padded dense_p width (and fused-matmul K)
PE_PAD = K_PAD - HIDDEN          # 96: pinyin embeddings padded so [h|pe] fills 128
PINYIN_PAD = 512                 # padded pinyin vocab (430 -> 512)
BIAS_W = VOCAB + K_PAD + PINYIN_PAD   # packed bias buffer width (768)
NEG_PAD = -1e30                  # pad-logit bias; exp() underflows to exactly 0
SUBLANE = 16                     # bf16 sublane granularity for row tiles


def _round_up(x, m):
    return (x + m - 1) // m * m


def _bert_head_kernel(e_ref, pe_ref, ln_ref, wv_ref, wp_ref, wo_ref, bias_ref,
                      out_ref, pout_ref):
    mxu_dtype = wv_ref.dtype

    # --- stand-in BERT hidden state: embedding sum + LayerNorm (f32 on VPU) --
    e = e_ref[...]                                         # (tn, H) f32
    gamma = ln_ref[0:1, :]
    beta = ln_ref[1:2, :]
    mu = jnp.mean(e, axis=-1, keepdims=True)
    var = jnp.mean((e - mu) ** 2, axis=-1, keepdims=True)
    h = (e - mu) * jax.lax.rsqrt(var + LN_EPS) * gamma + beta

    # packed biases: [lin_b(128) | dense_p_b pad->128 | pinyin_b pad->512]
    b_vocab = bias_ref[:, 0:VOCAB]
    b_dense = bias_ref[:, VOCAB:VOCAB + K_PAD]
    b_pinyin = bias_ref[:, VOCAB + K_PAD:VOCAB + K_PAD + PINYIN_PAD]

    # --- tied-weight vocab head: logits = h @ E^T + b, then LogSoftmax -------
    # wv_ref is word_emb.T (H, V) -> clean NN contraction, f32 accumulation.
    h_mxu = h.astype(mxu_dtype)
    logits = jnp.dot(h_mxu, wv_ref[...],
                     preferred_element_type=jnp.float32) + b_vocab
    # NOTE: ~640 f32 exps/row (128 vocab + 512 pinyin). With bf16 outputs the
    # EUP slot is the next candidate binding unit, especially on v5e.
    m = jnp.max(logits, axis=-1, keepdims=True)
    lse = m + jnp.log(jnp.sum(jnp.exp(logits - m), axis=-1, keepdims=True))
    out_ref[...] = (logits - lse).astype(out_ref.dtype)

    # --- pinyin branch: one fused K=128 matmul on x = [h | pe | 0] -----------
    # (padded weight rows/cols are zero; the concat is XLU lane shifts -- no
    #  VMEM scratch round-trip, no extra vst pressure.)
    x = jnp.concatenate([h_mxu, pe_ref[...]], axis=-1)     # (tn, 128) bf16
    ph = jnp.tanh(jnp.dot(x, wp_ref[...],
                          preferred_element_type=jnp.float32) + b_dense)
    plog = jnp.dot(ph.astype(mxu_dtype), wo_ref[...],
                   preferred_element_type=jnp.float32) + b_pinyin
    # padded columns carry bias = -1e30 -> exp(pad - max) == 0, so the
    # log-softmax over the 512 lanes equals the log-softmax over the real 430.
    m2 = jnp.max(plog, axis=-1, keepdims=True)
    lse2 = m2 + jnp.log(jnp.sum(jnp.exp(plog - m2), axis=-1, keepdims=True))
    pout_ref[...] = (plog - lse2).astype(pout_ref.dtype)


def bert_finetune_forward(params, input_ids, input_tyi, input_attn_mask,
                          input_init_ids, input_final_ids, input_tone_ids,
                          *, row_block=512, mxu_dtype=jnp.bfloat16, unpad=True):
    B, S = input_ids.shape
    N = B * S

    # --- row tiling: grid over token rows -------------------------------------
    assert row_block % SUBLANE == 0
    tn = min(row_block, _round_up(N, SUBLANE))
    # v7x has 2 TensorCores per chip: keep the "parallel" row grid at >= 2
    # steps so both cores get work (this also makes the toy test exercise the
    # pipelined path).  v5e/v6e are single-TC, where this is harmless.
    if _round_up(N, tn) == tn and tn > SUBLANE:
        tn = max(SUBLANE, _round_up(tn // 2, SUBLANE))
    n_pad = _round_up(N, tn)

    # --- glue: pad the id arrays, then gather directly into padded-shape e/pe
    # (avoids the extra full-HBM .at[:N].set() pad-copy passes of v2).
    def pad_ids(ids):
        return jnp.pad(ids.reshape(-1).astype(jnp.int32), (0, n_pad - N))

    ids = pad_ids(input_ids)
    tyi = pad_ids(input_tyi)
    pos_idx = jnp.pad(jnp.tile(jnp.arange(S, dtype=jnp.int32), B), (0, n_pad - N))
    e = (params["word_emb"][ids] + params["tok_type_emb"][tyi]
         + params["pos_emb"][pos_idx]).astype(jnp.float32)     # (n_pad, H) f32
    # TODO(synk): the full BERT transformer encoder stack (self-attention + FFN
    # layers) is not reproduced; `h` is the embedding+LayerNorm stand-in, so
    # input_attn_mask has no consumer here.
    del input_attn_mask

    # pinyin embeddings, lane-padded 37 -> 96 and shipped as bf16 (MXU-only
    # operand -> halves this input DMA stream).
    pe = jnp.concatenate([
        params["inits_emb"][pad_ids(input_init_ids)],
        params["finals_emb"][pad_ids(input_final_ids)],
        params["tones_emb"][pad_ids(input_tone_ids)],
        jnp.zeros((n_pad, PE_PAD - PINYIN_EXTRA), jnp.float32),
    ], axis=-1).astype(mxu_dtype)                               # (n_pad, 96)

    # --- one-time parameter packing / padding / transposition (outside kernel)
    ln = jnp.stack([params["ln_gamma"], params["ln_beta"]], axis=0)   # (2, H)
    wv = params["word_emb"].T.astype(mxu_dtype)                        # (H, V)
    wp = (jnp.zeros((K_PAD, K_PAD), jnp.float32)
          .at[:PINYIN_SIZE, :PINYIN_SIZE].set(params["dense_p_w"].T)
          ).astype(mxu_dtype)                                          # (128, 128)
    wo = (jnp.zeros((K_PAD, PINYIN_PAD), jnp.float32)
          .at[:PINYIN_SIZE, :NUM_PINYIN].set(params["pinyin_lin_w"].T)
          ).astype(mxu_dtype)                                          # (128, 512)
    bias = jnp.concatenate([
        params["lin_b"].astype(jnp.float32),
        jnp.zeros((K_PAD,), jnp.float32).at[:PINYIN_SIZE].set(params["dense_p_b"]),
        jnp.full((PINYIN_PAD,), NEG_PAD, jnp.float32)
           .at[:NUM_PINYIN].set(params["pinyin_lin_b"]),
    ]).reshape(1, BIAS_W)                                              # (1, 768)

    row = lambda i: (i, 0)
    const = lambda i: (0, 0)
    # Constant-index operands: block index never changes across the row grid,
    # so single-buffer them -- double-buffering only doubles their VMEM cost.
    const_spec = lambda shape: pl.BlockSpec(shape, const,
                                            pipeline_mode=pl.Buffered(1))

    out, pout = pl.pallas_call(
        _bert_head_kernel,
        out_shape=(jax.ShapeDtypeStruct((n_pad, VOCAB), mxu_dtype),
                   jax.ShapeDtypeStruct((n_pad, PINYIN_PAD), mxu_dtype)),
        grid=(n_pad // tn,),
        in_specs=[
            pl.BlockSpec((tn, HIDDEN), row),          # e (f32, LayerNorm input)
            pl.BlockSpec((tn, PE_PAD), row),          # pinyin embeddings (bf16)
            const_spec((2, HIDDEN)),                  # [gamma; beta]
            const_spec((HIDDEN, VOCAB)),              # word_emb.T   (bf16)
            const_spec((K_PAD, K_PAD)),               # fused dense_p weight
            const_spec((K_PAD, PINYIN_PAD)),          # pinyin_lin.T padded
            const_spec((1, BIAS_W)),                  # packed biases (f32)
        ],
        out_specs=(pl.BlockSpec((tn, VOCAB), row),
                   pl.BlockSpec((tn, PINYIN_PAD), row)),
        compiler_params=pltpu.CompilerParams(
            dimension_semantics=("parallel",)),
    )(e, pe, ln, wv, wp, wo, bias)

    if unpad:
        return (out[:N].reshape(B, S, VOCAB),
                pout[:N, :NUM_PINYIN].reshape(B, S, NUM_PINYIN))
    # Padded lane-dense slabs: rows N..n_pad are junk, pinyin columns 430..512
    # carry ~-1e30 log-probs -- consumers must mask them in the loss.  Skipping
    # the slice+reshape saves one more full-HBM copy of the largest output.
    return out, pout


def _reference(params, input_ids, input_tyi, input_init_ids,
               input_final_ids, input_tone_ids):
    B, S = input_ids.shape
    word = params["word_emb"][input_ids.reshape(-1)]
    tok = params["tok_type_emb"][input_tyi.reshape(-1)]
    pos = jnp.tile(params["pos_emb"][:S], (B, 1))
    e = word + tok + pos
    mu = jnp.mean(e, -1, keepdims=True)
    var = jnp.mean((e - mu) ** 2, -1, keepdims=True)
    h = (e - mu) * jax.lax.rsqrt(var + LN_EPS) * params["ln_gamma"] + params["ln_beta"]
    out = jax.nn.log_softmax(h @ params["word_emb"].T + params["lin_b"], axis=-1)
    pe = jnp.concatenate([
        params["inits_emb"][input_init_ids.reshape(-1)],
        params["finals_emb"][input_final_ids.reshape(-1)],
        params["tones_emb"][input_tone_ids.reshape(-1)],
    ], axis=-1)
    x = jnp.concatenate([h, pe], axis=-1)
    ph = jnp.tanh(x @ params["dense_p_w"].T + params["dense_p_b"])
    pout = jax.nn.log_softmax(ph @ params["pinyin_lin_w"].T + params["pinyin_lin_b"], -1)
    return out.reshape(B, S, VOCAB), pout.reshape(B, S, NUM_PINYIN)


if __name__ == "__main__":
    key = jax.random.PRNGKey(0)
    ks = jax.random.split(key, 16)
    init = lambda k, shape: 0.02 * jax.random.normal(k, shape, jnp.float32)
    params = {
        "word_emb":     init(ks[0], (VOCAB, HIDDEN)),
        "tok_type_emb": init(ks[1], (2, HIDDEN)),
        "pos_emb":      init(ks[2], (SEQ, HIDDEN)),
        "ln_gamma":     jnp.ones((HIDDEN,), jnp.float32),
        "ln_beta":      jnp.zeros((HIDDEN,), jnp.float32),
        "lin_b":        init(ks[3], (VOCAB,)),
        "inits_emb":    init(ks[4], (NUM_INITS, 16)),
        "finals_emb":   init(ks[5], (NUM_FINALS, 16)),
        "tones_emb":    init(ks[6], (NUM_TONES, 5)),
        "dense_p_w":    init(ks[7], (PINYIN_SIZE, PINYIN_SIZE)),
        "dense_p_b":    init(ks[8], (PINYIN_SIZE,)),
        "pinyin_lin_w": init(ks[9], (NUM_PINYIN, PINYIN_SIZE)),
        "pinyin_lin_b": init(ks[10], (NUM_PINYIN,)),
    }

    input_ids = jax.random.randint(ks[11], (BATCH, SEQ), 0, VOCAB)
    input_tyi = jax.random.randint(ks[12], (BATCH, SEQ), 0, 2)
    input_attn_mask = jnp.ones((BATCH, SEQ), jnp.int32)
    input_init_ids = jax.random.randint(ks[13], (BATCH, SEQ), 0, NUM_INITS)
    input_final_ids = jax.random.randint(ks[14], (BATCH, SEQ), 0, NUM_FINALS)
    input_tone_ids = jax.random.randint(ks[15], (BATCH, SEQ), 0, NUM_TONES)

    # With the default row_block, the toy N=32 problem auto-shrinks the row
    # tile to 16 so the grid has 2 steps (pipelined path / both v7x TCs).
    fwd = jax.jit(bert_finetune_forward)
    out, pout = fwd(params, input_ids, input_tyi, input_attn_mask,
                    input_init_ids, input_final_ids, input_tone_ids)
    jax.block_until_ready((out, pout))

    ref_out, ref_pout = _reference(
        params, input_ids, input_tyi, input_init_ids,
        input_final_ids, input_tone_ids)
    assert out.shape == (BATCH, SEQ, VOCAB)
    assert pout.shape == (BATCH, SEQ, NUM_PINYIN)
    # tolerance loosened vs the pure-f32 reference: MXU operands are bf16
    # (f32 accumulation) and the kernel stores bf16 log-probs; observed error
    # is a couple of 1e-2 on values of magnitude ~log(vocab).
    assert jnp.allclose(out, ref_out, atol=4e-2, rtol=2e-2)
    assert jnp.allclose(pout, ref_pout, atol=4e-2, rtol=2e-2)

    print("KERNEL_OK")
</pallas_src>

<mosaic_0001>
module attributes {stable_mosaic.version = 11 : i64} {
  func.func @_bert_head_kernel(%arg0: i32, %arg1: memref<16x32xf32, #tpu.memory_space<vmem>>, %arg2: memref<16x96xbf16, #tpu.memory_space<vmem>>, %arg3: memref<2x32xf32, #tpu.memory_space<vmem>>, %arg4: memref<32x128xbf16, #tpu.memory_space<vmem>>, %arg5: memref<128x128xbf16, #tpu.memory_space<vmem>>, %arg6: memref<128x512xbf16, #tpu.memory_space<vmem>>, %arg7: memref<1x768xf32, #tpu.memory_space<vmem>>, %arg8: memref<16x128xbf16, #tpu.memory_space<vmem>>, %arg9: memref<16x512xbf16, #tpu.memory_space<vmem>>) attributes {dimension_semantics = [#tpu.dimension_semantics<parallel>], iteration_bounds = array<i64: 2>, scalar_prefetch = 0 : i64, scratch_operands = 0 : i64, tpu.core_type = #tpu.core_type<tc>, window_params = [{transform_indices = @transform_0, window_bounds = array<i64: 16, 32>}, {transform_indices = @transform_1, window_bounds = array<i64: 16, 96>}, {pipeline_mode = #tpu.pipeline_mode<synchronous>, transform_indices = @transform_2, window_bounds = array<i64: 2, 32>}, {pipeline_mode = #tpu.pipeline_mode<synchronous>, transform_indices = @transform_3, window_bounds = array<i64: 32, 128>}, {pipeline_mode = #tpu.pipeline_mode<synchronous>, transform_indices = @transform_4, window_bounds = array<i64: 128, 128>}, {pipeline_mode = #tpu.pipeline_mode<synchronous>, transform_indices = @transform_5, window_bounds = array<i64: 128, 512>}, {pipeline_mode = #tpu.pipeline_mode<synchronous>, transform_indices = @transform_6, window_bounds = array<i64: 1, 768>}, {transform_indices = @transform_7, window_bounds = array<i64: 16, 128>}, {transform_indices = @transform_8, window_bounds = array<i64: 16, 512>}]} {
    %c0 = arith.constant 0 : index
    %c0_0 = arith.constant 0 : index
    %0 = vector.load %arg1[%c0, %c0_0] : memref<16x32xf32, #tpu.memory_space<vmem>>, vector<16x32xf32>
    %c0_1 = arith.constant 0 : index
    %c0_2 = arith.constant 0 : index
    %1 = vector.load %arg3[%c0_1, %c0_2] : memref<2x32xf32, #tpu.memory_space<vmem>>, vector<1x32xf32>
    %c1 = arith.constant 1 : index
    %c0_3 = arith.constant 0 : index
    %2 = vector.load %arg3[%c1, %c0_3] : memref<2x32xf32, #tpu.memory_space<vmem>>, vector<1x32xf32>
    %cst = arith.constant dense<0.000000e+00> : vector<16xf32>
    %3 = vector.multi_reduction <add>, %0, %cst [1] : vector<16x32xf32> to vector<16xf32>
    %4 = vector.shape_cast %3 : vector<16xf32> to vector<16x1xf32>
    %cst_4 = arith.constant 3.200000e+01 : f32
    %5 = vector.broadcast %cst_4 : f32 to vector<16x1xf32>
    %6 = arith.divf %4, %5 : vector<16x1xf32>
    %7 = vector.broadcast %6 : vector<16x1xf32> to vector<16x32xf32>
    %8 = arith.subf %0, %7 : vector<16x32xf32>
    %9 = arith.mulf %8, %8 : vector<16x32xf32>
    %cst_5 = arith.constant dense<0.000000e+00> : vector<16xf32>
    %10 = vector.multi_reduction <add>, %9, %cst_5 [1] : vector<16x32xf32> to vector<16xf32>
    %11 = vector.shape_cast %10 : vector<16xf32> to vector<16x1xf32>
    %cst_6 = arith.constant 3.200000e+01 : f32
    %12 = vector.broadcast %cst_6 : f32 to vector<16x1xf32>
    %13 = arith.divf %11, %12 : vector<16x1xf32>
    %14 = vector.broadcast %6 : vector<16x1xf32> to vector<16x32xf32>
    %15 = arith.subf %0, %14 : vector<16x32xf32>
    %cst_7 = arith.constant 9.99999996E-13 : f32
    %16 = vector.broadcast %cst_7 : f32 to vector<16x1xf32>
    %17 = arith.addf %13, %16 : vector<16x1xf32>
    %18 = math.rsqrt %17 : vector<16x1xf32>
    %19 = vector.broadcast %18 : vector<16x1xf32> to vector<16x32xf32>
    %20 = arith.mulf %15, %19 : vector<16x32xf32>
    %21 = vector.broadcast %1 : vector<1x32xf32> to vector<16x32xf32>
    %22 = arith.mulf %20, %21 : vector<16x32xf32>
    %23 = vector.broadcast %2 : vector<1x32xf32> to vector<16x32xf32>
    %24 = arith.addf %22, %23 : vector<16x32xf32>
    %c0_8 = arith.constant 0 : index
    %c0_9 = arith.constant 0 : index
    %25 = vector.load %arg7[%c0_8, %c0_9] : memref<1x768xf32, #tpu.memory_space<vmem>>, vector<1x128xf32>
    %c0_10 = arith.constant 0 : index
    %c128 = arith.constant 128 : index
    %26 = vector.load %arg7[%c0_10, %c128] : memref<1x768xf32, #tpu.memory_space<vmem>>, vector<1x128xf32>
    %c0_11 = arith.constant 0 : index
    %c256 = arith.constant 256 : index
    %27 = vector.load %arg7[%c0_11, %c256] : memref<1x768xf32, #tpu.memory_space<vmem>>, vector<1x512xf32>
    %28 = arith.truncf %24 : vector<16x32xf32> to vector<16x32xbf16>
    %c0_12 = arith.constant 0 : index
    %c0_13 = arith.constant 0 : index
    %29 = vector.load %arg4[%c0_12, %c0_13] : memref<32x128xbf16, #tpu.memory_space<vmem>>, vector<32x128xbf16>
    %cst_14 = arith.constant dense<0.000000e+00> : vector<16x128xf32>
    %30 = tpu.matmul %28, %29, %cst_14 {dimension_numbers = #tpu.dot_dimension_numbers<[1], [0], [0], [1], [0, 0, 1, 1], [], []>} : vector<16x32xbf16>, vector<32x128xbf16>, vector<16x128xf32> -> vector<16x128xf32>
    %31 = vector.broadcast %25 : vector<1x128xf32> to vector<16x128xf32>
    %32 = arith.addf %30, %31 : vector<16x128xf32>
    %cst_15 = arith.constant dense<0xFF800000> : vector<16xf32>
    %33 = vector.multi_reduction <maximumf>, %32, %cst_15 [1] : vector<16x128xf32> to vector<16xf32>
    %34 = vector.shape_cast %33 : vector<16xf32> to vector<16x1xf32>
    %35 = vector.broadcast %34 : vector<16x1xf32> to vector<16x128xf32>
    %36 = arith.subf %32, %35 : vector<16x128xf32>
    %37 = math.exp %36 : vector<16x128xf32>
    %cst_16 = arith.constant dense<0.000000e+00> : vector<16xf32>
    %38 = vector.multi_reduction <add>, %37, %cst_16 [1] : vector<16x128xf32> to vector<16xf32>
    %39 = vector.shape_cast %38 : vector<16xf32> to vector<16x1xf32>
    %40 = math.log %39 : vector<16x1xf32>
    %41 = arith.addf %34, %40 : vector<16x1xf32>
    %42 = vector.broadcast %41 : vector<16x1xf32> to vector<16x128xf32>
    %43 = arith.subf %32, %42 : vector<16x128xf32>
    %44 = arith.truncf %43 : vector<16x128xf32> to vector<16x128xbf16>
    %c0_17 = arith.constant 0 : index
    %c0_18 = arith.constant 0 : index
    %45 = vector.load %arg8[%c0_17, %c0_18] : memref<16x128xbf16, #tpu.memory_space<vmem>>, vector<16x128xbf16>
    tpu.vector_store %arg8[%c0_17, %c0_18], %44 {strides = array<i32>} : memref<16x128xbf16, #tpu.memory_space<vmem>>, vector<16x128xbf16>,
    %c0_19 = arith.constant 0 : index
    %c0_20 = arith.constant 0 : index
    %46 = vector.load %arg2[%c0_19, %c0_20] : memref<16x96xbf16, #tpu.memory_space<vmem>>, vector<16x96xbf16>
    %47 = tpu.concatenate %28, %46 in 1 : vector<16x32xbf16>, vector<16x96xbf16> -> vector<16x128xbf16>
    %c0_21 = arith.constant 0 : index
    %c0_22 = arith.constant 0 : index
    %48 = vector.load %arg5[%c0_21, %c0_22] : memref<128x128xbf16, #tpu.memory_space<vmem>>, vector<128x128xbf16>
    %cst_23 = arith.constant dense<0.000000e+00> : vector<16x128xf32>
    %49 = tpu.matmul %47, %48, %cst_23 {dimension_numbers = #tpu.dot_dimension_numbers<[1], [0], [0], [1], [0, 0, 1, 1], [], []>} : vector<16x128xbf16>, vector<128x128xbf16>, vector<16x128xf32> -> vector<16x128xf32>
    %50 = vector.broadcast %26 : vector<1x128xf32> to vector<16x128xf32>
    %51 = arith.addf %49, %50 : vector<16x128xf32>
    %52 = math.tanh %51 : vector<16x128xf32>
    %53 = arith.truncf %52 : vector<16x128xf32> to vector<16x128xbf16>
    %c0_24 = arith.constant 0 : index
    %c0_25 = arith.constant 0 : index
    %54 = vector.load %arg6[%c0_24, %c0_25] : memref<128x512xbf16, #tpu.memory_space<vmem>>, vector<128x512xbf16>
    %cst_26 = arith.constant dense<0.000000e+00> : vector<16x512xf32>
    %55 = tpu.matmul %53, %54, %cst_26 {dimension_numbers = #tpu.dot_dimension_numbers<[1], [0], [0], [1], [0, 0, 1, 1], [], []>} : vector<16x128xbf16>, vector<128x512xbf16>, vector<16x512xf32> -> vector<16x512xf32>
    %56 = vector.broadcast %27 : vector<1x512xf32> to vector<16x512xf32>
    %57 = arith.addf %55, %56 : vector<16x512xf32>
    %cst_27 = arith.constant dense<0xFF800000> : vector<16xf32>
    %58 = vector.multi_reduction <maximumf>, %57, %cst_27 [1] : vector<16x512xf32> to vector<16xf32>
    %59 = vector.shape_cast %58 : vector<16xf32> to vector<16x1xf32>
    %60 = vector.broadcast %59 : vector<16x1xf32> to vector<16x512xf32>
    %61 = arith.subf %57, %60 : vector<16x512xf32>
    %62 = math.exp %61 : vector<16x512xf32>
    %cst_28 = arith.constant dense<0.000000e+00> : vector<16xf32>
    %63 = vector.multi_reduction <add>, %62, %cst_28 [1] : vector<16x512xf32> to vector<16xf32>
    %64 = vector.shape_cast %63 : vector<16xf32> to vector<16x1xf32>
    %65 = math.log %64 : vector<16x1xf32>
    %66 = arith.addf %59, %65 : vector<16x1xf32>
    %67 = vector.broadcast %66 : vector<16x1xf32> to vector<16x512xf32>
    %68 = arith.subf %57, %67 : vector<16x512xf32>
    %69 = arith.truncf %68 : vector<16x512xf32> to vector<16x512xbf16>
    %c0_29 = arith.constant 0 : index
    %c0_30 = arith.constant 0 : index
    %70 = vector.load %arg9[%c0_29, %c0_30] : memref<16x512xbf16, #tpu.memory_space<vmem>>, vector<16x512xbf16>
    tpu.vector_store %arg9[%c0_29, %c0_30], %69 {strides = array<i32>} : memref<16x512xbf16, #tpu.memory_space<vmem>>, vector<16x512xbf16>,
    return
  }
  func.func @transform_0(%arg0: i32) -> (i32, i32) {
    %c0_i32 = arith.constant 0 : i32
    %c0_i32_0 = arith.constant 0 : i32
    return %arg0, %c0_i32 : i32, i32
  }
  func.func @transform_1(%arg0: i32) -> (i32, i32) {
    %c0_i32 = arith.constant 0 : i32
    %c0_i32_0 = arith.constant 0 : i32
    return %arg0, %c0_i32 : i32, i32
  }
  func.func @transform_2(%arg0: i32) -> (i32, i32) {
    %c0_i32 = arith.constant 0 : i32
    %c0_i32_0 = arith.constant 0 : i32
    %c0_i32_1 = arith.constant 0 : i32
    return %c0_i32, %c0_i32_0 : i32, i32
  }
  func.func @transform_3(%arg0: i32) -> (i32, i32) {
    %c0_i32 = arith.constant 0 : i32
    %c0_i32_0 = arith.constant 0 : i32
    %c0_i32_1 = arith.constant 0 : i32
    return %c0_i32, %c0_i32_0 : i32, i32
  }
  func.func @transform_4(%arg0: i32) -> (i32, i32) {
    %c0_i32 = arith.constant 0 : i32
    %c0_i32_0 = arith.constant 0 : i32
    %c0_i32_1 = arith.constant 0 : i32
    return %c0_i32, %c0_i32_0 : i32, i32
  }
  func.func @transform_5(%arg0: i32) -> (i32, i32) {
    %c0_i32 = arith.constant 0 : i32
    %c0_i32_0 = arith.constant 0 : i32
    %c0_i32_1 = arith.constant 0 : i32
    return %c0_i32, %c0_i32_0 : i32, i32
  }
  func.func @transform_6(%arg0: i32) -> (i32, i32) {
    %c0_i32 = arith.constant 0 : i32
    %c0_i32_0 = arith.constant 0 : i32
    %c0_i32_1 = arith.constant 0 : i32
    return %c0_i32, %c0_i32_0 : i32, i32
  }
  func.func @transform_7(%arg0: i32) -> (i32, i32) {
    %c0_i32 = arith.constant 0 : i32
    %c0_i32_0 = arith.constant 0 : i32
    return %arg0, %c0_i32 : i32, i32
  }
  func.func @transform_8(%arg0: i32) -> (i32, i32) {
    %c0_i32 = arith.constant 0 : i32
    %c0_i32_0 = arith.constant 0 : i32
    return %arg0, %c0_i32 : i32, i32
  }
}

</mosaic_0001>

<bundles_post_ra>
// kernel: bert_finetune_forward.1
= control target key start
LH: loop header
LB: loop body
LE: loop exit
PB: predicated region body
PF: predicated region fallthrough
CT: control target
= control target key end

     0   :  { %s1957_s0 = inlined_call_operand.vmem [shape: f32[32,32], index: 0, kind: input, shape index: {}]   ;;  %s1958_s1 = inlined_call_operand.vmem [shape: bf16[32,96], index: 1, kind: input, shape index: {}]   ;;  %s1959_s2 = inlined_call_operand.vmem [shape: f32[2,32], index: 2, kind: input, shape index: {}]   ;;  %s1960_s3 = inlined_call_operand.vmem [shape: bf16[32,128], index: 3, kind: input, shape index: {}]   ;;  %s1961_s4 = inlined_call_operand.vmem [shape: bf16[128,128], index: 4, kind: input, shape index: {}]   ;;  %s1962_s5 = inlined_call_operand.vmem [shape: bf16[128,512], index: 5, kind: input, shape index: {}]   ;;  %s1963_s6 = inlined_call_operand.vmem [shape: f32[1,768], index: 6, kind: input, shape index: {}]   ;;  %s1964_s7 = inlined_call_operand.hbm [shape: bf16[32,128], index: 7, kind: output, shape index: {0}]   ;;  %s1965_s8 = inlined_call_operand.hbm [shape: bf16[32,512], index: 8, kind: output, shape index: {1}]  }
   0x1   :  { %1966 = sst [smem:[#allocation8_spill]] %s1957_s0 }
   0x2   :  { %1967 = sst [smem:[#allocation9_spill]] %s1958_s1 }
   0x3   :  { %1968 = sst [smem:[#allocation10_spill]] %s1959_s2 }
   0x4   :  { %14 = vsyncpa [#allocation3], 0 }
   0x5   :  { %16 = vsyncpa [#allocation3 + $0x1], 0 }
   0x6   :  { %17 = vsyncpa [#allocation5], 0 }
   0x7   :  { %19 = vsyncpa [#allocation5 + $0x1], 0  ;;  %s1523_s27 = smov 0   ;;  %s1525_s28 = smov 0  }
   0x8   :  { %s1527_s29 = smov 0   ;;  %s1529_s30 = smov 0  }
   0x9 LB: > { %s1544_s9 = sadd.s32 4294967295, %s1470_s30   ;;  %s1041_s10 = sadd.s32 4294967294, %s1470_s30   ;;  %s1470_s30 = sphi %s1529_s30, %s1977_s30   ;;  %s1466_s29 = sphi %s1527_s29, %s1976_s29   ;;  %s1462_s28 = sphi %s1525_s28, %s1975_s28   ;;  %s1458_s27 = sphi %s1523_s27, %s1974_s27  }
   0xa   : > { %s1548_s11 = sadd.s32 1, %s1470_s30   ;;  %s189_s12 = sadd.s32 1, %s1466_s29 }
   0xb   : > { %s186_s13 = ssub.s32 %s1470_s30, %s1548_s11  ;;  %p199_p0 = scmp.ne.s32.totalorder %s1466_s29, %s1462_s28 }
   0xc   : > { %p187_p1 = scmp.eq.s32.totalorder %s186_s13, 0  ;;  %p200_p2 = scmp.eq.s32.totalorder %s1544_s9, 1 }
   0xd   : > { %p205_p3 = scmp.ne.s32.totalorder %s1462_s28, %s1458_s27  ;;  %p206_p4 = scmp.eq.s32.totalorder %s1041_s10, 1 }
   0xe   : > { %s1559_s14 = scalar_select %p187_p1, %s1466_s29, %s189_s12  }
   0xf   : > { %p1561_p5 = por %p200_p2, %p199_p0  ;;  %p1565_p6 = por %p206_p4, %p205_p3 }
  0x10   : > { %p1044_p7 = scmp.ge.s32.totalorder %s1470_s30, 1  ;;  %p283_p8 = scmp.lt.s32.totalorder %s1470_s30, 3 }
  0x12   : > { %p284_p9 = pnand %p1044_p7, %p283_p8 }
  0x13   : > { %s1047_s17 = sshll.u32 (!%p284_p9), %s1544_s9, 1  ;;  %s1971_s0 = sld [smem:[#allocation8_spill]] (!%p284_p9) }
  0x14   : > { %287 = sbr.rel (%p284_p9) target bundleno = 887 (0x377), region = 48  ;;  %p328_p10 = scmp.lt.s32.totalorder (!%p284_p9), %s1047_s17, 3 }
  0x15   : > { %s1972_s1 = sld [smem:[#allocation9_spill]] (!%p284_p9)  ;;  %s1473_s26 = smov (!%p284_p9), 32  }
  0x16   : > { %s1973_s2 = sld [smem:[#allocation10_spill]] (!%p284_p9)  ;;  %s1887_s13 = sand.u32 (!%p284_p9), 1, %s1462_s28  }
  0x17   : > { %s1276_s19 = sshll.u32 (!%p284_p9), %s1544_s9, 3  ;;  %s1278_s10 = sshll.u32 (!%p284_p9), %s1544_s9, 5 }
  0x18   : > { %s912_s23 = scalar_lea.hbm (!%p284_p9), %s1964_s7, %s1276_s19  ;;  %s930_s19 = scalar_lea.hbm (!%p284_p9), %s1965_s8, %s1278_s10 }
  0x19   : > { %s1979_s17 = smov (!%p328_p10, %s1047_s17), 3  ;;  %vm346_vm0 = vcmask 261120   ;;  %v1472_v4 = vmov 32.0   ;;  %v1243_v22 = vld [vmem:[%s1961_s4 + $0x38] sm:$0xff]  ;;  %v1242_v23 = vld [vmem:[%s1961_s4 + $0x30] sm:$0xff]  ;;  %v1241_v24 = vld [vmem:[%s1961_s4 + $0x28] sm:$0xff] }
  0x1a   : > { %s1048_s18 = sshll.u32 %s1979_s17, 3  ;;  %1338 = vrcp.f32 %v1472_v4  ;;  %s1050_s22 = sshll.u32 %s1979_s17, 2  ;;  %555 = vmatpush.bf16.msra.mxu1 %v1243_v22  ;;  %v1240_v25 = vld [vmem:[%s1961_s4 + $0x20] sm:$0xff]  ;;  %v1239_v26 = vld [vmem:[%s1961_s4 + $0x18] sm:$0xff]  ;;  %v1238_v27 = vld [vmem:[%s1961_s4 + $0x10] sm:$0xff] }
  0x1b   : > { %s331_s21 = scalar_lea.vmem %s1971_s0, %s1048_s18  ;;  %s337_s25 = scalar_lea.vmem %s1972_s1, %s1050_s22  ;;  %v1234_v28 = vld [vmem:[%s1960_s3 + $0x8] sm:$0xff]  ;;  %v1233_v32 = vld [vmem:[%s1960_s3] sm:$0xff]  ;;  %v1274_v41 = vld [vmem:[%s1962_s5 + $0xec] sm:$0xf0] }
  0x1c   : > { %v342_v0 = vld [vmem:[%s331_s21] sm:$0xff]  ;;  %v343_v2 = vld [vmem:[%s331_s21 + $0x8] sm:$0xff]  ;;  %442 = vmatpush.bf16.msra.mxu0 %v1234_v28  ;;  %v1212_v44 = vld [vmem:[%s1962_s5 + $0xf0] sm:$0xf0]  ;;  %s1046_s17 = sshll.u32 %s1887_s13, 5  ;;  %s1045_s18 = sshll.u32 %s1887_s13, 3 }
  0x1d   : > { %v347_v1 = vsel %vm346_vm0, %v342_v0, 0.0  ;;  %v350_v3 = vsel %vm346_vm0, %v343_v2, 0.0  ;;  %v1235_v7 = vld [vmem:[%s337_s25] sm:$0xff]  ;;  %v1237_v31 = vld [vmem:[%s1961_s4 + $0x8] sm:$0xff]  ;;  %v1275_v48 = vld [vmem:[%s1962_s5 + $0xf4] sm:$0xf0] }
  0x1e   : > { %348 = vadd.xlane.f32.xlu0 %v347_v1  ;;  %483 = vrot.lane.b32.xlu2 %v1235_v7, %s1473_s26  ;;  %v1236_v34 = vld [vmem:[%s1961_s4] sm:$0xff]  ;;  %v1218_v45 = vld [vmem:[%s1962_s5 + $0xe8] sm:$0xf]  ;;  %v1273_v49 = vld [vmem:[%s1962_s5 + $0xec] sm:$0xf]  ;;  %s1896_s20 = scalar_lea.vmem [#allocation4], %s1046_s17 }
  0x1f   : > { %556 = vmatpush.bf16.msra.mxu1 %v1242_v23  ;;  %v1210_v40 = vld [vmem:[%s1962_s5 + $0xe0] sm:$0xf]  ;;  %v1272_v42 = vld [vmem:[%s1962_s5 + $0xe4] sm:$0xf]  ;;  %v1220_v50 = vld [vmem:[%s1962_s5 + $0xf8] sm:$0xf0]  ;;  %v1219_v51 = vor.u32 %v1275_v48, %v1218_v45 }
  0x20   : > { %v1339_v5 = vpop.eup %1338  ;;  %443 = vmatpush.bf16.msra.mxu0 %v1233_v32  ;;  %v1211_v43 = vor.u32 %v1274_v41, %v1210_v40  ;;  %v1215_v47 = vor.u32 %v1272_v42, %v1212_v44  ;;  %v1223_v52 = vor.u32 %v1273_v49, %v1220_v50  ;;  %v1194_v53 = vld [vmem:[%s1962_s5 + $0xc0] sm:$0xf]  ;;  %v1270_v54 = vld [vmem:[%s1962_s5 + $0xcc] sm:$0xf0]  ;;  %v1268_v55 = vld [vmem:[%s1962_s5 + $0xc4] sm:$0xf] }
  0x21   : > { %v354_v6 = vmul.f32 32.0, %v1339_v5  ;;  %vm358_vm1 = vweird.f32 %v1339_v5  ;;  %v1195_v57 = vor.u32 %v1270_v54, %v1194_v53  ;;  %v1196_v58 = vld [vmem:[%s1962_s5 + $0xd0] sm:$0xf0]  ;;  %v1202_v59 = vld [vmem:[%s1962_s5 + $0xc8] sm:$0xf]  ;;  %s319_s24 = scalar_lea.vmem [#allocation2], %s1045_s18 }
  0x22   : > { %773 = vmatpush.bf16.msra.mxu2 %v1211_v43  ;;  %787 = vmatpush.bf16.msra.mxu3 %v1215_v47  ;;  %v1199_v60 = vor.u32 %v1268_v55, %v1196_v58  ;;  %v1271_v61 = vld [vmem:[%s1962_s5 + $0xd4] sm:$0xf0]  ;;  %v1269_v62 = vld [vmem:[%s1962_s5 + $0xcc] sm:$0xf]  ;;  %v1204_v63 = vld [vmem:[%s1962_s5 + $0xd8] sm:$0xf0] }
  0x23   : > { %v355_v8 = vsub.f32 1.0, %v354_v6  ;;  %557 = vmatpush.bf16.msra.mxu1 %v1241_v24  ;;  %v1203_v1 = vor.u32 %v1271_v61, %v1202_v59  ;;  %v1266_v4 = vld [vmem:[%s1962_s5 + $0xac] sm:$0xf0]  ;;  %v1264_v7 = vld [vmem:[%s1962_s5 + $0xa4] sm:$0xf]  ;;  %s913_s25 = sshll.u32 %s319_s24, 4  ;;  %s914_s25 = int_to_ptr.vmem [resolvable:$true] %s913_s25 }
  0x24   : > { %801 = vmatpush.bf16.msrb.mxu0 %v1219_v51  ;;  %v1334_v23 = vld [vmem:[%s1973_s2] ss:$0 sm:$0xff]  ;;  %v1260_v41 = vld [vmem:[%s1962_s5 + $0x84] sm:$0xf]  ;;  %v1164_v43 = vld [vmem:[%s1962_s5 + $0x90] sm:$0xf0] }
  0x25   : > { %v356_v9 = vmul.f32 %v1339_v5, %v355_v8  ;;  %v1180_v8 = vld [vmem:[%s1962_s5 + $0xb0] sm:$0xf0]  ;;  %v1170_v44 = vld [vmem:[%s1962_s5 + $0x88] sm:$0xf]  ;;  %v1167_v45 = vor.u32 %v1260_v41, %v1164_v43  ;;  %v1261_v47 = vld [vmem:[%s1962_s5 + $0x8c] sm:$0xf] }
  0x26   : > { %351 = vadd.xlane.f32.xlu0 %v350_v3  ;;  %v1178_v3 = vld [vmem:[%s1962_s5 + $0xa0] sm:$0xf]  ;;  %774 = vmatpush.bf16.msra.mxu2 %v1195_v57  ;;  %v1172_v48 = vld [vmem:[%s1962_s5 + $0x98] sm:$0xf0]  ;;  %v1256_v53 = vld [vmem:[%s1962_s5 + $0x64] sm:$0xf] }
  0x27   : > { %v357_v10 = vadd.f32 %v1339_v5, %v356_v9  ;;  %558 = vmatpush.bf16.msra.mxu1 %v1240_v25  ;;  %v1179_v6 = vor.u32 %v1266_v4, %v1178_v3  ;;  %v1186_v9 = vld [vmem:[%s1962_s5 + $0xa8] sm:$0xf]  ;;  %788 = vmatpush.bf16.msra.mxu3 %v1199_v60  ;;  %v1175_v50 = vor.u32 %v1261_v47, %v1172_v48  ;;  %v1146_v51 = vld [vmem:[%s1962_s5 + $0x60] sm:$0xf]  ;;  %v1148_v55 = vld [vmem:[%s1962_s5 + $0x70] sm:$0xf0] }
  0x28   : > { %802 = vmatpush.bf16.msrb.mxu0 %v1203_v1  ;;  %v1259_v57 = vld [vmem:[%s1962_s5 + $0x74] sm:$0xf0]  ;;  %v1151_v58 = vor.u32 %v1256_v53, %v1148_v55  ;;  %v1257_v60 = vld [vmem:[%s1962_s5 + $0x6c] sm:$0xf]  ;;  %v1156_v61 = vld [vmem:[%s1962_s5 + $0x78] sm:$0xf0] }
  0x29   : > { %v359_v11 = vsel %vm358_vm1, %v1339_v5, %v357_v10  ;;  %v1252_v1 = vld [vmem:[%s1962_s5 + $0x44] sm:$0xf]  ;;  %v1132_v3 = vld [vmem:[%s1962_s5 + $0x50] sm:$0xf0]  ;;  %v1138_v4 = vld [vmem:[%s1962_s5 + $0x48] sm:$0xf] }
  0x2a   : > { %775 = vmatpush.bf16.msra.mxu2 %v1179_v6  ;;  %v1135_v6 = vor.u32 %v1252_v1, %v1132_v3  ;;  %s915_s26 = sshll.u32 %s912_s23, 4  ;;  %s896_s18 = scalar_lea.sflag [#allocation3], %s1887_s13  ;;  %s916_s26 = int_to_ptr.hbm [resolvable:$true] %s915_s26 }
  0x2b   : > { %559 = vmatpush.bf16.msra.mxu1 %v1239_v26  ;;  %s1390_s21 = sshra.s32 %s916_s26, 4  ;;  %s1396_s9 = scalar_lea.hbm %s1964_s7, 16  ;;  %s1391_s21 = int_to_ptr.hbm [resolvable:$true] %s1390_s21 }
  0x2c   : > { %s1392_s22 = scalar_lea.hbm %s1391_s21, 8  ;;  %p1397_p0 = scmp.lt.s32.totalorder %s1391_s21, %s1964_s7 }
  0x2d   : > { %p1393_p11 = scmp.ne.s32.totalorder %s1391_s21, %s1392_s22  ;;  %p1398_p1 = scmp.lt.s32.totalorder %s1396_s9, %s1392_s22 }
  0x2f   : > { %560 = vmatpush.bf16.msra.mxu1 %v1238_v27  ;;  %v1335_v27 = vld [vmem:[%s1973_s2 + $0x1] ss:$0 sm:$0xff]  ;;  %p1394_p12 = pnand %p1393_p11, %p1561_p5  ;;  %p1399_p2 = por %p1398_p1, %p1397_p0 }
  0x31   : > { %p1395_p13 = pneg %p1394_p12 }
  0x33   : > { %561 = vmatpush.bf16.msra.mxu1 %v1237_v31  ;;  %p1400_p3 = pnand %p1399_p2, %p1395_p13 }
  0x37   : > { %562 = vmatpush.bf16.msra.mxu1 %v1236_v34 }
  0x3b   : > { %815 = vmatpush.bf16.msrb.mxu1 %v1223_v52  ;;  %v1258_v52 = vld [vmem:[%s1962_s5 + $0x6c] sm:$0xf0] }
  0x3c   : > { %v1147_v54 = vor.u32 %v1258_v52, %v1146_v51  ;;  %v406_v51 = vld [vmem:[%s1963_s6 + $0x2] sm:$0xf] }
  0x3d   : > { %v608_v55 = vperm.slane %v406_v51, 3 }
  0x91   : > { %v349_v12 = vpop.xlane.xlu0 %348 }
  0x92   : > { %v360_v13 = vmul.f32 %v359_v11, %v349_v12  ;;  %v1183_v12 = vor.u32 %v1264_v7, %v1180_v8  ;;  %v1253_v8 = vld [vmem:[%s1962_s5 + $0x4c] sm:$0xf] }
  0x94   : > { %v1580_v14 = vsub.f32 %v342_v0, %v360_v13  ;;  %v1267_v13 = vld [vmem:[%s1962_s5 + $0xb4] sm:$0xf0]  ;;  %789 = vmatpush.bf16.msra.mxu3 %v1183_v12  ;;  %v1250_v12 = vld [vmem:[%s1962_s5 + $0x2c] sm:$0xf0] }
  0x96   : > { %v364_v15 = vmul.f32 %v1580_v14, %v1580_v14 }
  0x98   : > { %v366_v16 = vsel %vm346_vm0, %v364_v15, 0.0  ;;  %v1265_v15 = vld [vmem:[%s1962_s5 + $0xac] sm:$0xf]  ;;  %790 = vmatpush.bf16.msra.mxu3 %v1167_v45 }
  0x99   : > { %367 = vadd.xlane.f32.xlu1 %v366_v16  ;;  %v352_v17 = vpop.xlane.xlu0 %351  ;;  %v1188_v16 = vld [vmem:[%s1962_s5 + $0xb8] sm:$0xf0] }
  0x9a   : > { %v361_v18 = vmul.f32 %v359_v11, %v352_v17  ;;  %v1187_v17 = vor.u32 %v1267_v13, %v1186_v9  ;;  %v1140_v9 = vld [vmem:[%s1962_s5 + $0x58] sm:$0xf0]  ;;  %v1248_v13 = vld [vmem:[%s1962_s5 + $0x24] sm:$0xf] }
  0x9c   : > { %v1585_v19 = vsub.f32 %v343_v2, %v361_v18  ;;  %v1207_v2 = vor.u32 %v1269_v62, %v1204_v63  ;;  %v1191_v18 = vor.u32 %v1265_v15, %v1188_v16  ;;  %803 = vmatpush.bf16.msrb.mxu0 %v1187_v17  ;;  %v1159_v62 = vor.u32 %v1257_v60, %v1156_v61  ;;  %v1130_v63 = vld [vmem:[%s1962_s5 + $0x40] sm:$0xf]  ;;  %v1116_v16 = vld [vmem:[%s1962_s5 + $0x30] sm:$0xf0]  ;;  %v1122_v17 = vld [vmem:[%s1962_s5 + $0x28] sm:$0xf] }
  0x9d   : > { %791 = vmatpush.bf16.msra.mxu3 %v1151_v58 }
  0x9e   : > { %v365_v20 = vmul.f32 %v1585_v19, %v1585_v19  ;;  %816 = vmatpush.bf16.msrb.mxu1 %v1207_v2 }
  0xa0   : > { %v369_v21 = vsel %vm346_vm0, %v365_v20, 0.0 }
  0xa1   : > { %370 = vadd.xlane.f32.xlu1 %v369_v21  ;;  %792 = vmatpush.bf16.msra.mxu3 %v1135_v6 }
  0xa2   : > { %817 = vmatpush.bf16.msrb.mxu1 %v1191_v18  ;;  %v1251_v18 = vld [vmem:[%s1962_s5 + $0x34] sm:$0xf0] }
  0xa6   : > { %818 = vmatpush.bf16.msrb.mxu1 %v1175_v50 }
  0xaa   : > { %819 = vmatpush.bf16.msrb.mxu1 %v1159_v62 }
 0x10c   : > { %v368_v29 = vpop.xlane.xlu1 %367 }
 0x10d   : > { %v372_v30 = vmul.f32 %v368_v29, %v359_v11 }
 0x10f   : > { %v374_v33 = vadd.f32 1e-12, %v372_v30 }
 0x111   : > { %1340 = vrsqrt.f32 %v374_v33  ;;  %vm382_vm3 = vweird.f32 %v374_v33 }
 0x114   : > { %v371_v35 = vpop.xlane.xlu1 %370 }
 0x115   : > { %v373_v36 = vmul.f32 %v371_v35, %v359_v11 }
 0x117   : > { %v1341_v37 = vpop.eup %1340  ;;  %v1620_v38 = vadd.f32 1e-12, %v373_v36 }
 0x118   : > { %v377_v39 = vmul.f32 %v1341_v37, %v374_v33  ;;  %vm383_vm2 = vweird.f32 %v1341_v37 }
 0x119   : > { %1342 = vrsqrt.f32 %v1620_v38  ;;  %vm384_vm4 = vmor %vm382_vm3, %vm383_vm2  ;;  %vm392_vm6 = vweird.f32 %v1620_v38 }
 0x11a   : > { %v378_v46 = vmul.f32 %v1341_v37, %v377_v39 }
 0x11c   : > { %v379_v56 = vmul.f32 0.5, %v378_v46  ;;  %v1263_v46 = vld [vmem:[%s1962_s5 + $0x94] sm:$0xf0] }
 0x11d   : > { %v1171_v49 = vor.u32 %v1263_v46, %v1170_v44 }
 0x11e   : > { %v380_v0 = vsub.f32 1.5, %v379_v56  ;;  %v1154_v56 = vld [vmem:[%s1962_s5 + $0x68] sm:$0xf] }
 0x11f   : > { %v1343_v5 = vpop.eup %1342  ;;  %804 = vmatpush.bf16.msrb.mxu0 %v1171_v49  ;;  %v1155_v59 = vor.u32 %v1259_v57, %v1154_v56  ;;  %v605_v56 = vperm.slane %v406_v51, 0  ;;  %v606_v57 = vperm.slane %v406_v51, 1 }
 0x120   : > { %v381_v10 = vmul.f32 %v1341_v37, %v380_v0  ;;  %v387_v11 = vmul.f32 %v1343_v5, %v1620_v38  ;;  %vm393_vm5 = vweird.f32 %v1343_v5  ;;  %v1162_v38 = vld [vmem:[%s1962_s5 + $0x80] sm:$0xf]  ;;  %v1254_v0 = vld [vmem:[%s1962_s5 + $0x4c] sm:$0xf0] }
 0x121   : > { %vm394_vm7 = vmor %vm392_vm6, %vm393_vm5  ;;  %v1131_v2 = vor.u32 %v1254_v0, %v1130_v63 }
 0x122   : > { %v385_v20 = vsel %vm384_vm4, %v1341_v37, %v381_v10  ;;  %v388_v21 = vmul.f32 %v1343_v5, %v387_v11  ;;  %v484_v37 = vpop.permute.xlu2 %483  ;;  %v1143_v10 = vor.u32 %v1253_v8, %v1140_v9  ;;  %v1114_v11 = vld [vmem:[%s1962_s5 + $0x20] sm:$0xf] }
 0x123   : > { %v396_v22 = vmul.f32 %v385_v20, %v1580_v14  ;;  %805 = vmatpush.bf16.msrb.mxu0 %v1155_v59  ;;  %v1115_v15 = vor.u32 %v1250_v12, %v1114_v11  ;;  %v1119_v20 = vor.u32 %v1248_v13, %v1116_v16 }
 0x124   : > { %v389_v24 = vmul.f32 0.5, %v388_v21  ;;  %820 = vmatpush.bf16.msrb.mxu1 %v1143_v10  ;;  %v1123_v21 = vor.u32 %v1251_v18, %v1122_v17 }
 0x125   : > { %v399_v26 = vmul.f32 %v1334_v23, %v396_v22  ;;  %v1249_v22 = vld [vmem:[%s1962_s5 + $0x2c] sm:$0xf]  ;;  %793 = vmatpush.bf16.msra.mxu3 %v1119_v20 }
 0x126   : > { %v390_v25 = vsub.f32 1.5, %v389_v24  ;;  %v1098_v24 = vld [vmem:[%s1962_s5] sm:$0xf] }
 0x127   : > { %v402_v30 = vadd.f32 %v1335_v27, %v399_v26  ;;  %v1246_v26 = vld [vmem:[%s1962_s5 + $0xc] sm:$0xf0] }
 0x128   : > { %v391_v28 = vmul.f32 %v1343_v5, %v390_v25 }
 0x129   : > { %v407_v33 = vpack.c.bf16 %v402_v30, %v402_v30  ;;  %v1106_v30 = vld [vmem:[%s1962_s5 + $0x8] sm:$0xf] }
 0x12a   : > { %v395_v14 = vsel %vm394_vm7, %v1343_v5, %v391_v28  ;;  %v1255_v5 = vld [vmem:[%s1962_s5 + $0x54] sm:$0xf0]  ;;  %v1100_v28 = vld [vmem:[%s1962_s5 + $0x10] sm:$0xf0] }
 0x12b   : > { %v397_v29 = vmul.f32 %v395_v14, %v1585_v19  ;;  %v418_v35 = vunpack.c.l.b16 %v407_v33  ;;  %v1262_v19 = vld [vmem:[%s1962_s5 + $0x8c] sm:$0xf0]  ;;  %v1139_v7 = vor.u32 %v1255_v5, %v1138_v4  ;;  %v1099_v14 = vor.u32 %v1246_v26, %v1098_v24 }
 0x12c   : > { %v1163_v42 = vor.u32 %v1262_v19, %v1162_v38  ;;  %v1337_v38 = vld [vmem:[%s1963_s6 + $0x1] ss:$0 sm:$0xff] }
 0x12d   : > { %v400_v31 = vmul.f32 %v1334_v23, %v397_v29  ;;  %806 = vmatpush.bf16.msrb.mxu0 %v1139_v7  ;;  %v1124_v23 = vld [vmem:[%s1962_s5 + $0x38] sm:$0xf0] }
 0x12e   : > { %776 = vmatpush.bf16.msra.mxu2 %v1163_v42  ;;  %v1127_v25 = vor.u32 %v1249_v22, %v1124_v23 }
 0x12f   : > { %v403_v32 = vadd.f32 %v1335_v27, %v400_v31  ;;  %v1244_v27 = vld [vmem:[%s1962_s5 + $0x4] sm:$0xf]  ;;  %v1247_v31 = vld [vmem:[%s1962_s5 + $0x14] sm:$0xf0] }
 0x130   : > { %v1103_v29 = vor.u32 %v1244_v27, %v1100_v28  ;;  %821 = vmatpush.bf16.msrb.mxu1 %v1127_v25  ;;  %v1107_v33 = vor.u32 %v1247_v31, %v1106_v30 }
 0x131   : > { %v408_v34 = vpack.c.bf16 %v403_v32, %v403_v32  ;;  %v1245_v32 = vld [vmem:[%s1962_s5 + $0xc] sm:$0xf]  ;;  %807 = vmatpush.bf16.msrb.mxu0 %v1123_v21 }
 0x132   : > { %777 = vmatpush.bf16.msra.mxu2 %v1147_v54  ;;  %794 = vmatpush.bf16.msra.mxu3 %v1103_v29  ;;  %v607_v54 = vperm.slane %v406_v51, 2 }
 0x133   : > { %v419_v36 = vunpack.c.l.b16 %v408_v34  ;;  %v1108_v34 = vld [vmem:[%s1962_s5 + $0x18] sm:$0xf0] }
 0x135   : > { %v420_v39 = vpack.c.b16 %v419_v36, %v418_v35  ;;  %v1111_v35 = vor.u32 %v1245_v32, %v1108_v34  ;;  %808 = vmatpush.bf16.msrb.mxu0 %v1107_v33  ;;  %v1336_v36 = vld [vmem:[%s1963_s6] ss:$0 sm:$0xff] }
 0x136   : > { %778 = vmatpush.bf16.msra.mxu2 %v1131_v2 }
 0x137   : > { %1059 = vmatmul.msk.bf16.vlgmr.msra.gmra.mxu0 %vm346_vm0, %v420_v39  ;;  %v486_v40 = vsel %vm346_vm0, %v420_v39, %v484_v37  ;;  %822 = vmatpush.bf16.msrb.mxu1 %v1111_v35 }
 0x138   : > { %563 = vmatmul.bf16.vlgmr.msra.gmra.mxu1 %v486_v40 }
 0x13a   : > { %779 = vmatpush.bf16.msra.mxu2 %v1115_v15 }
 0x13e   : > { %780 = vmatpush.bf16.msra.mxu2 %v1099_v14 }
 0x1b4   : > { %v445_v37 = vpop.f32.mrf.mxu0 }
 0x1b5   : > { %v1831_v39 = vadd.f32 %v1336_v36, %v445_v37  ;;  %v564_v40 = vpop.f32.mrf.mxu1 }
 0x1b6   : > { %v565_v19 = vadd.f32 %v1337_v38, %v564_v40 }
 0x1b7   : > { %450 = vmax.xlane.f32.xlu1 %v1831_v39 }
 0x1b8   : > { %1344 = vtanh.f32 %v565_v19 }
 0x1bc   : > { %v447_v50 = vpop.f32.mrf.mxu0 }
 0x1bd   : > { %v566_v41 = vpop.f32.mrf.mxu1  ;;  %v1868_v15 = vadd.f32 %v1336_v36, %v447_v50 }
 0x1be   : > { %v567_v42 = vadd.f32 %v1337_v38, %v566_v41  ;;  %v1345_v43 = vpop.eup %1344 }
 0x1c0   : > { %1346 = vtanh.f32 %v567_v42 }
 0x1c6   : > { %v1347_v44 = vpop.eup %1346 }
 0x1c7   : > { %v571_v45 = vpack.c.bf16 %v1347_v44, %v1345_v43 }
 0x1c9   : > { %781 = vmatmul.bf16.vlgmr.msra.gmra.mxu2 %v571_v45  ;;  %795 = vmatmul.bf16.vlgmr.msra.gmra.mxu3 %v571_v45 }
 0x1ca   : > { %809 = vmatmul.bf16.vlgmr.msrb.gmra.mxu0 %v571_v45  ;;  %823 = vmatmul.bf16.vlgmr.msrb.gmra.mxu1 %v571_v45 }
 0x22a   : > { %v1837_v46 = vpop.xlane.xlu1 %450 }
 0x22b   : > { %v454_v47 = vsub.f32 %v1831_v39, %v1837_v46 }
 0x22d   : > { %v456_v48 = vmul.f32 1.442695, %v454_v47 }
 0x22f   : > { %1348 = vpow2.f32 %v456_v48 }
 0x235   : > { %v1349_v49 = vpop.eup %1348 }
 0x236   : > { %460 = vadd.xlane.f32.xlu1 %v1349_v49 }
 0x247   : > { %v810_v52 = vpop.f32.mrf.mxu0  ;;  %v824_v53 = vpop.f32.mrf.mxu1 }
 0x248   : > { %v1844_v60 = vadd.f32 %v810_v52, %v607_v54  ;;  %v1846_v61 = vadd.f32 %v824_v53, %v608_v55 }
 0x24c   : > { %v782_v58 = vpop.f32.mrf.mxu2  ;;  %v796_v59 = vpop.f32.mrf.mxu3 }
 0x24d   : > { %v1848_v62 = vadd.f32 %v782_v58, %v605_v56  ;;  %v1850_v63 = vadd.f32 %v796_v59, %v606_v57 }
 0x24f   : > { %v829_v0 = vmax.f32 %v1848_v62, %v1844_v60  ;;  %v830_v1 = vmax.f32 %v1850_v63, %v1846_v61  ;;  %v812_v3 = vpop.f32.mrf.mxu0  ;;  %v826_v4 = vpop.f32.mrf.mxu1 }
 0x250   : > { %v1856_v7 = vadd.f32 %v812_v3, %v607_v54  ;;  %v1858_v8 = vadd.f32 %v826_v4, %v608_v55 }
 0x251   : > { %v831_v2 = vmax.f32 %v829_v0, %v830_v1 }
 0x253   : > { %832 = vmax.xlane.f32.xlu2 %v831_v2 }
 0x254   : > { %v784_v5 = vpop.f32.mrf.mxu2  ;;  %v798_v6 = vpop.f32.mrf.mxu3 }
 0x255   : > { %v1860_v9 = vadd.f32 %v784_v5, %v605_v56  ;;  %v1862_v10 = vadd.f32 %v798_v6, %v606_v57 }
 0x257   : > { %v834_v11 = vmax.f32 %v1860_v9, %v1856_v7  ;;  %v835_v12 = vmax.f32 %v1862_v10, %v1858_v8 }
 0x259   : > { %v836_v13 = vmax.f32 %v834_v11, %v835_v12 }
 0x25b   : > { %837 = vmax.xlane.f32.xlu0 %v836_v13 }
 0x263   : > { %452 = vmax.xlane.f32.xlu0 %v1868_v15 }
 0x2a9   : > { %v461_v53 = vpop.xlane.xlu1 %460 }
 0x2c6   : > { %v833_v16 = vpop.xlane.xlu2 %832 }
 0x2c7   : > { %v839_v17 = vsub.f32 %v1848_v62, %v833_v16  ;;  %v840_v18 = vsub.f32 %v1850_v63, %v833_v16  ;;  %v841_v20 = vsub.f32 %v1844_v60, %v833_v16  ;;  %v842_v21 = vsub.f32 %v1846_v61, %v833_v16 }
 0x2c9   : > { %v847_v22 = vmul.f32 1.442695, %v839_v17  ;;  %v849_v23 = vmul.f32 1.442695, %v840_v18  ;;  %v851_v24 = vmul.f32 1.442695, %v841_v20 }
 0x2ca   : > { %v853_v25 = vmul.f32 1.442695, %v842_v21 }
 0x2cb   : > { %1350 = vpow2.f32 %v847_v22 }
 0x2cc   : > { %1352 = vpow2.f32 %v849_v23 }
 0x2cd   : > { %1354 = vpow2.f32 %v851_v24 }
 0x2ce   : > { %v1875_v26 = vpop.xlane.xlu0 %837  ;;  %1356 = vpow2.f32 %v853_v25 }
 0x2cf   : > { %v843_v27 = vsub.f32 %v1860_v9, %v1875_v26  ;;  %v844_v28 = vsub.f32 %v1862_v10, %v1875_v26  ;;  %v845_v34 = vsub.f32 %v1856_v7, %v1875_v26  ;;  %v846_v19 = vsub.f32 %v1858_v8, %v1875_v26 }
 0x2d1   : > { %v1351_v14 = vpop.eup %1350  ;;  %v855_v30 = vmul.f32 1.442695, %v843_v27  ;;  %v857_v31 = vmul.f32 1.442695, %v844_v28  ;;  %v859_v41 = vmul.f32 1.442695, %v845_v34 }
 0x2d2   : > { %v1353_v29 = vpop.eup %1352  ;;  %v861_v45 = vmul.f32 1.442695, %v846_v19 }
 0x2d3   : > { %v863_v32 = vadd.f32 %v1353_v29, %v1351_v14  ;;  %v1355_v33 = vpop.eup %1354  ;;  %1358 = vpow2.f32 %v855_v30 }
 0x2d4   : > { %v1357_v36 = vpop.eup %1356  ;;  %1360 = vpow2.f32 %v857_v31 }
 0x2d5   : > { %v864_v35 = vadd.f32 %v1355_v33, %v863_v32 }
 0x2d6   : > { %v453_v37 = vpop.xlane.xlu0 %452 }
 0x2d7   : > { %v455_v40 = vsub.f32 %v1868_v15, %v453_v37  ;;  %v865_v38 = vadd.f32 %v1357_v36, %v864_v35 }
 0x2d9   : > { %v458_v42 = vmul.f32 1.442695, %v455_v40  ;;  %866 = vadd.xlane.f32.xlu1 %v865_v38  ;;  %v1359_v43 = vpop.eup %1358 }
 0x2da   : > { %v1361_v44 = vpop.eup %1360 }
 0x2db   : > { %1362 = vpow2.f32 %v458_v42  ;;  %v868_v47 = vadd.f32 %v1361_v44, %v1359_v43 }
 0x2dc   : > { %1364 = vpow2.f32 %v859_v41 }
 0x2dd   : > { %1366 = vpow2.f32 %v861_v45 }
 0x2e1   : > { %v1363_v48 = vpop.eup %1362 }
 0x2e2   : > { %462 = vadd.xlane.f32.xlu0 %v1363_v48  ;;  %v1365_v49 = vpop.eup %1364 }
 0x2e3   : > { %v869_v50 = vadd.f32 %v1365_v49, %v868_v47  ;;  %v1367_v51 = vpop.eup %1366 }
 0x2e5   : > { %v870_v52 = vadd.f32 %v1367_v51, %v869_v50 }
 0x2ea   : > { %871 = vadd.xlane.f32.xlu0 %v870_v52 }
 0x34c   : > { %v867_v54 = vpop.xlane.xlu1 %866 }
 0x34d   : > { %1368 = vlog2.f32 %v867_v54 }
 0x34e   : > { %1370 = vlog2.f32 %v461_v53 }
 0x353   : > { %v1369_v55 = vpop.eup %1368 }
 0x354   : > { %v874_v56 = vmul.f32 0.6931472, %v1369_v55  ;;  %v1371_v58 = vpop.eup %1370 }
 0x355   : > { %v463_v57 = vpop.xlane.xlu0 %462  ;;  %v465_v4 = vmul.f32 0.6931472, %v1371_v58 }
 0x356   : > { %v877_v59 = vadd.f32 %v874_v56, %v833_v16  ;;  %1372 = vlog2.f32 %v463_v57 }
 0x358   : > { %v879_v0 = vsub.f32 %v1848_v62, %v877_v59  ;;  %v880_v1 = vsub.f32 %v1850_v63, %v877_v59  ;;  %v881_v2 = vsub.f32 %v1844_v60, %v877_v59  ;;  %v882_v3 = vsub.f32 %v1846_v61, %v877_v59 }
 0x359   : > { %v468_v62 = vadd.f32 %v465_v4, %v1837_v46 }
 0x35a   : > { %v887_v5 = vpack.c.bf16 %v880_v1, %v879_v0  ;;  %v888_v6 = vpack.c.bf16 %v882_v3, %v881_v2 }
 0x35b   : > { %v470_v61 = vsub.f32 %v1831_v39, %v468_v62 }
 0x35c   : > { %v1373_v11 = vpop.eup %1372  ;;  %891 = vst [vmem:[%s1896_s20] sm:$0xff] %v887_v5 }
 0x35d   : > { %v467_v12 = vmul.f32 0.6931472, %v1373_v11  ;;  %v872_v63 = vpop.xlane.xlu0 %871  ;;  %892 = vst [vmem:[%s1896_s20 + $0x8] sm:$0xff] %v888_v6 }
 0x35e   : > { %1374 = vlog2.f32 %v872_v63 }
 0x35f   : > { %v469_v60 = vadd.f32 %v467_v12, %v453_v37 }
 0x361   : > { %v471_v13 = vsub.f32 %v1868_v15, %v469_v60 }
 0x363   : > { %v1282_v46 = vpack.c.bf16 %v471_v13, %v470_v61 }
 0x364   : > { %v1375_v16 = vpop.eup %1374 }
 0x365   : > { %v876_v17 = vmul.f32 0.6931472, %v1375_v16  ;;  %1283 = vst [vmem:[%s319_s24] sm:$0xff] %v1282_v46  }
 0x366   : > { %1403 = shalt.err (!%p1400_p3)
}
 0x367   : > { %s1474_s24 = smov 64   ;;  %s1475_s10 = smov 4   ;;  %v878_v39 = vadd.f32 %v876_v17, %v1875_v26 }
 0x368   : > { %1284 = dma.vmem_to_hbm [thread:$0]  (%p1561_p5), %s914_s25, 128, %s916_s26, %s896_s18, %s1474_s24, %s1474_s24, %s1475_s10  }
 0x369   : > { %s931_s0 = sshll.u32 %s1896_s20, 4  ;;  %v883_v15 = vsub.f32 %v1860_v9, %v878_v39  ;;  %v884_v18 = vsub.f32 %v1862_v10, %v878_v39  ;;  %v885_v20 = vsub.f32 %v1856_v7, %v878_v39  ;;  %v886_v21 = vsub.f32 %v1858_v8, %v878_v39  ;;  %s933_s1 = sshll.u32 %s930_s19, 4  ;;  %s932_s0 = int_to_ptr.vmem [resolvable:$true] %s931_s0  ;;  %s934_s1 = int_to_ptr.hbm [resolvable:$true] %s933_s1 }
 0x36a   : > { %s901_s2 = scalar_lea.sflag [#allocation5], %s1887_s13  ;;  %s1418_s25 = sshra.s32 %s934_s1, 4  ;;  %s1419_s25 = int_to_ptr.hbm [resolvable:$true] %s1418_s25 }
 0x36b   : > { %v889_v22 = vpack.c.bf16 %v884_v18, %v883_v15  ;;  %v890_v23 = vpack.c.bf16 %v886_v21, %v885_v20  ;;  %s1420_s26 = scalar_lea.hbm %s1419_s25, 32  ;;  %s1424_s18 = scalar_lea.hbm %s1965_s8, 64 }
 0x36c   : > { %p1421_p4 = scmp.ne.s32.totalorder %s1419_s25, %s1420_s26  ;;  %p1425_p9 = scmp.lt.s32.totalorder %s1419_s25, %s1965_s8 }
 0x36d   : > { %893 = vst [vmem:[%s1896_s20 + $0x10] sm:$0xff] %v889_v22  ;;  %p1426_p10 = scmp.lt.s32.totalorder %s1424_s18, %s1420_s26 }
 0x36e   : > { %894 = vst [vmem:[%s1896_s20 + $0x18] sm:$0xff] %v890_v23  ;;  %p1422_p7 = pnand %p1421_p4, %p1561_p5 }
 0x36f   : > { %p1427_p11 = por %p1426_p10, %p1425_p9 }
 0x370   : > { %p1423_p8 = pneg %p1422_p7 }
 0x372   : > { %p1428_p12 = pnand %p1427_p11, %p1423_p8 }
 0x374   : > { %1431 = shalt.err (!%p1428_p12)
}
 0x375   : > { %s1476_s13 = smov 256   ;;  %s1477_s20 = smov 16  }
 0x376   : > { %1285 = dma.vmem_to_hbm [thread:$0]  (%p1561_p5), %s932_s0, 512, %s934_s1, %s901_s2, %s1476_s13, %s1476_s13, %s1477_s20  }
 0x377 PF: > { %p1295_p13 = scmp.ge.s32.totalorder %s1470_s30, 2  ;;  %s948_s22 = sand.u32 1, %s1458_s27  }
 0x378   : > { %s949_s23 = scalar_lea.sflag [#allocation3], %s948_s22 }
 0x379   : > { %p1289_p0 = pnand %p1295_p13, %p1565_p6 }
 0x37b   : > { %p1290_p1 = pneg %p1289_p0 }
 0x37d   : > { %1449 = dma.done.wait (%p1290_p1), %s949_s23, 128  }
 0x37e   : > { %1451 = vsyncadd (%p1290_p1), %s949_s23, 4294967168  ;;  %s959_s9 = scalar_lea.sflag [#allocation5], %s948_s22 }
 0x37f   : > { %1453 = dma.done.wait (%p1290_p1), %s959_s9, 512  }
 0x380   : > { %1455 = vsyncadd (%p1290_p1), %s959_s9, 4294966784  ;;  %p22_p5 = scmp.ge.s32.totalorder %s1548_s11, 4   ;;  %s1974_s27 = smov %s1462_s28 }
 0x381   : > { %s1975_s28 = smov %s1466_s29  ;;  %s1976_s29 = smov %s1559_s14 }
 0x382   : > { %s1977_s30 = smov %s1548_s11  ;;  %24 = sbr.rel (!%p22_p5) target bundleno = 9 (0x9), region = 103 }
 0x387   :  { %965 = vsyncpa [#allocation3], 1 }
 0x388   :  { %967 = vsyncpa [#allocation3 + $0x1], 1 }
 0x389   :  { %968 = vsyncpa [#allocation5], 1 }
 0x38a   :  { %970 = vsyncpa [#allocation5 + $0x1], 1 }

</bundles_post_ra>
